<compile_context>
chip_gen: v6e
topology: v6e:2x2x1
jax: 0.10.0
libtpu: 0.0.40
codegen_flags: <defaults>
</compile_context>

<pallas_src>
import functools

import jax
import jax.numpy as jnp
from jax.experimental import pallas as pl
from jax.experimental.pallas import tpu as pltpu

# CFG constants (deterministic, in-script; the original reads CFG.CKD_temp / CFG.lamda_kd)
CKD_TEMP = 2.0
LAMDA_KD = 0.5


def _lskd_tile_kernel(s_ref, t_ref, lab_ref, out_ref, *, temp, b_total):
    """One batch tile: emit (kl_sum, ce_sum) partial sums for this tile."""
    s = s_ref[...].astype(jnp.float32)      # [TB, C] raw student logits
    t = t_ref[...].astype(jnp.float32)      # [TB, C] raw teacher logits
    lab = lab_ref[...]                      # [TB, 1] int32 hard labels
    TB, C = s.shape
    inv_temp = 1.0 / temp

    def stats(x):
        # Row max: reused for (a) numerically-safe fused mean/var and (b) softmax.
        m = jnp.max(x, axis=-1, keepdims=True)                    # [TB, 1]
        xc = x - m                                                # centered, max(xc)=0
        s1 = jnp.sum(xc, axis=-1, keepdims=True)
        s2 = jnp.sum(xc * xc, axis=-1, keepdims=True)
        # unbiased variance (ddof=1), fused single pass over xc
        var = jnp.maximum((s2 - s1 * s1 * (1.0 / C)) / (C - 1), 0.0)
        std = jnp.sqrt(var)
        # epsilon is added to std (NOT var) to match the PyTorch module exactly.
        inv_scale = inv_temp / (1e-7 + std)                       # = 1/(T*(1e-7+std))
        # shift invariance: log_softmax(normalize(x)/T) == log_softmax(xc*inv_scale)
        z = xc * inv_scale                                        # max(z) == 0, exp-safe
        e = jnp.exp(z)
        se = jnp.sum(e, axis=-1, keepdims=True)
        return xc, z, e, se

    # ---- distillation loss (standardized logits), algebraic rewrite ----
    # sum_c p_T*(log p_T - log p_S) = (sum_c e_T*(z_T - z_S))/se_T + log(se_S) - log(se_T)
    xc_s, z_s, _e_s, se_s = stats(s)
    _xc_t, z_t, e_t, se_t = stats(t)
    num = jnp.sum(e_t * (z_t - z_s), axis=-1, keepdims=True)      # [TB, 1]
    kl_row = num / se_t + jnp.log(se_s) - jnp.log(se_t)           # exact per-row division

    # ---- hard cross-entropy on RAW student logits ----
    e_raw = jnp.exp(xc_s)
    lse_raw = jnp.log(jnp.sum(e_raw, axis=-1, keepdims=True))     # LSE(s) - max(s)
    classes = jax.lax.broadcasted_iota(jnp.int32, (TB, C), 1)
    picked = jnp.sum(jnp.where(classes == lab, xc_s, 0.0),        # s[i,lab] - max(s)_i
                     axis=-1, keepdims=True)
    ce_row = lse_raw - picked                                     # [TB, 1]

    # ---- mask rows beyond the real batch (ragged last block) -------------
    # Out-of-bounds rows may contain garbage -> NaN/Inf; use where-selection
    # (NOT multiply) so they cannot poison the sums.
    row = jax.lax.broadcasted_iota(jnp.int32, (TB, 1), 0) + pl.program_id(0) * TB
    valid = row < b_total
    kl_sum = jnp.sum(jnp.where(valid, kl_row, 0.0))
    ce_sum = jnp.sum(jnp.where(valid, ce_row, 0.0))

    # Lane-masked (1, 1, 128) partial-sum slab: lane 0 = kl_sum, lane 1 = ce_sum.
    lane = jax.lax.broadcasted_iota(jnp.int32, (1, 1, 128), 2)
    out_ref[...] = jnp.where(lane == 0, kl_sum,
                             jnp.where(lane == 1, ce_sum, 0.0))


def _choose_tile_rows(B, C):
    """Pick a batch tile size.

    Budget: per-block f32 bytes (tb*C*4) <= ~2 MiB, so
      2 inputs x 2 pipeline buffers + ~6 live f32 [tb,C] temporaries ~< 20 MiB,
    comfortably under the explicit 48 MiB VMEM limit on every generation
    (incl. v7x's 64 MiB physical VMEM) while large enough to amortize the
    ~0.35 us/grid-step overhead.  When B >= 16, cap tb so there are at least
    two grid tiles (feeds both TensorCores on v7x).
    """
    if B <= 8:
        return B                                   # block == full batch dim
    tb = (2 * 1024 * 1024) // max(C * 4, 1)
    tb = max(8, min(2048, (tb // 8) * 8))
    if B >= 16:
        half = ((-(-B // 2)) + 7) // 8 * 8         # round_up(ceil(B/2), 8)
        tb = min(tb, half)
    tb = min(tb, -(-B // 8) * 8)                   # don't tile past the batch
    return max(tb, 8)


def lskd_forward(students_preds, teachers_preds, hard_label,
                 temp=CKD_TEMP, alpha=LAMDA_KD):
    """students_preds/teachers_preds: [B, C] (f32 or bf16); hard_label: int[B]."""
    B, C = students_preds.shape
    tb = _choose_tile_rows(B, C)
    n_tiles = pl.cdiv(B, tb)

    lab = hard_label.astype(jnp.int32).reshape(B, 1)

    kernel = functools.partial(_lskd_tile_kernel, temp=float(temp), b_total=B)

    # NOTE: if profiling shows exposed DMA after the KL rewrite, the two logits
    # BlockSpecs can take pipeline_mode=pl.Buffered(3) within the VMEM budget.
    partials = pl.pallas_call(
        kernel,
        out_shape=jax.ShapeDtypeStruct((n_tiles, 1, 128), jnp.float32),
        grid=(n_tiles,),
        in_specs=[
            pl.BlockSpec((tb, C), lambda i: (i, 0)),
            pl.BlockSpec((tb, C), lambda i: (i, 0)),
            pl.BlockSpec((tb, 1), lambda i: (i, 0)),
        ],
        out_specs=pl.BlockSpec((1, 1, 128), lambda i: (i, 0, 0)),
        compiler_params=pltpu.CompilerParams(
            dimension_semantics=("parallel",),      # independent tiles -> both TCs on v7x
            vmem_limit_bytes=48 * 1024 * 1024),     # explicit budget (v5e default is 16 MiB)
    )(students_preds, teachers_preds, lab)

    # Tiny final reduction in JAX: divide by GLOBAL batch, temper, alpha mix (done once).
    kl_sum = jnp.sum(partials[:, 0, 0])
    ce_sum = jnp.sum(partials[:, 0, 1])
    distillation_loss = (kl_sum / B) * (temp ** 2)
    students_loss = ce_sum / B
    loss = alpha * students_loss + (1.0 - alpha) * distillation_loss
    return loss, students_loss, distillation_loss


def _lskd_reference(s, t, lab, temp=CKD_TEMP, alpha=LAMDA_KD):
    """Pure-JAX reference mirroring the PyTorch forward, for verification."""
    def normalize(x):
        mean = jnp.mean(x, axis=-1, keepdims=True)
        std = jnp.std(x, axis=-1, keepdims=True, ddof=1)
        return (x - mean) / (1e-7 + std)

    ls = jax.nn.log_softmax(normalize(s) / temp, axis=1)
    lt = jax.nn.log_softmax(normalize(t) / temp, axis=1)
    pt = jnp.exp(lt)
    distill = jnp.mean(jnp.sum(pt * (lt - ls), axis=1)) * temp ** 2
    logp = jax.nn.log_softmax(s, axis=1)
    hard = -jnp.mean(jnp.take_along_axis(logp, lab[:, None], axis=1))
    loss = alpha * hard + (1 - alpha) * distill
    return loss, hard, distill


def _check(B, C, key):
    k1, k2, k3 = jax.random.split(key, 3)
    students = jax.random.normal(k1, (B, C), dtype=jnp.float32) * 2.0
    teachers = jax.random.normal(k2, (B, C), dtype=jnp.float32) * 2.0
    labels = jax.random.randint(k3, (B,), 0, C, dtype=jnp.int32)

    loss, hard, distill = lskd_forward(students, teachers, labels)
    jax.block_until_ready(loss)

    ref_loss, ref_hard, ref_distill = _lskd_reference(students, teachers, labels)
    assert jnp.allclose(loss, ref_loss, rtol=1e-3, atol=1e-4), (loss, ref_loss)
    assert jnp.allclose(hard, ref_hard, rtol=1e-3, atol=1e-4), (hard, ref_hard)
    assert jnp.allclose(distill, ref_distill, rtol=1e-3, atol=1e-4), (distill, ref_distill)


def _check_bf16(B, C, key):
    # bf16 logits at the boundary (kernel upcasts to f32 in VMEM): smoke test.
    k1, k2, k3 = jax.random.split(key, 3)
    students = (jax.random.normal(k1, (B, C), dtype=jnp.float32) * 2.0).astype(jnp.bfloat16)
    teachers = (jax.random.normal(k2, (B, C), dtype=jnp.float32) * 2.0).astype(jnp.bfloat16)
    labels = jax.random.randint(k3, (B,), 0, C, dtype=jnp.int32)
    loss, hard, distill = lskd_forward(students, teachers, labels)
    jax.block_until_ready(loss)
    assert bool(jnp.isfinite(loss)) and bool(jnp.isfinite(hard)) and bool(jnp.isfinite(distill))


if __name__ == "__main__":
    key = jax.random.PRNGKey(0)
    k_a, k_b, k_c = jax.random.split(key, 3)
    _check(B=8, C=128, key=k_a)       # aligned small case (single tile)
    _check(B=20, C=100, key=k_b)      # ragged case: >=2 tiles, ragged last block + row masking
    _check_bf16(B=20, C=100, key=k_c) # bf16 boundary contract smoke test
    print("KERNEL_OK")
</pallas_src>

<mosaic_0001>
module attributes {stable_mosaic.version = 11 : i64} {
  func.func @_lskd_tile_kernel(%arg0: i32, %arg1: memref<8x128xf32, #tpu.memory_space<vmem>>, %arg2: memref<8x128xf32, #tpu.memory_space<vmem>>, %arg3: memref<8x1xi32, #tpu.memory_space<vmem>>, %arg4: memref<1x1x128xf32, #tpu.memory_space<vmem>>) attributes {dimension_semantics = [#tpu.dimension_semantics<parallel>], iteration_bounds = array<i64: 1>, scalar_prefetch = 0 : i64, scratch_operands = 0 : i64, tpu.core_type = #tpu.core_type<tc>, window_params = [{transform_indices = @transform_0, window_bounds = array<i64: 8, 128>}, {transform_indices = @transform_1, window_bounds = array<i64: 8, 128>}, {transform_indices = @transform_2, window_bounds = array<i64: 8, 1>}, {transform_indices = @transform_3, window_bounds = array<i64: 1, 1, 128>}]} {
    %c0 = arith.constant 0 : index
    %c0_0 = arith.constant 0 : index
    %0 = vector.load %arg1[%c0, %c0_0] : memref<8x128xf32, #tpu.memory_space<vmem>>, vector<8x128xf32>
    %c0_1 = arith.constant 0 : index
    %c0_2 = arith.constant 0 : index
    %1 = vector.load %arg2[%c0_1, %c0_2] : memref<8x128xf32, #tpu.memory_space<vmem>>, vector<8x128xf32>
    %c0_3 = arith.constant 0 : index
    %c0_4 = arith.constant 0 : index
    %2 = vector.load %arg3[%c0_3, %c0_4] : memref<8x1xi32, #tpu.memory_space<vmem>>, vector<8x1xi32>
    %cst = arith.constant dense<0xFF800000> : vector<8xf32>
    %3 = vector.multi_reduction <maximumf>, %0, %cst [1] : vector<8x128xf32> to vector<8xf32>
    %4 = vector.shape_cast %3 : vector<8xf32> to vector<8x1xf32>
    %5 = vector.broadcast %4 : vector<8x1xf32> to vector<8x128xf32>
    %6 = arith.subf %0, %5 : vector<8x128xf32>
    %cst_5 = arith.constant dense<0.000000e+00> : vector<8xf32>
    %7 = vector.multi_reduction <add>, %6, %cst_5 [1] : vector<8x128xf32> to vector<8xf32>
    %8 = vector.shape_cast %7 : vector<8xf32> to vector<8x1xf32>
    %9 = arith.mulf %6, %6 : vector<8x128xf32>
    %cst_6 = arith.constant dense<0.000000e+00> : vector<8xf32>
    %10 = vector.multi_reduction <add>, %9, %cst_6 [1] : vector<8x128xf32> to vector<8xf32>
    %11 = vector.shape_cast %10 : vector<8xf32> to vector<8x1xf32>
    %12 = arith.mulf %8, %8 : vector<8x1xf32>
    %cst_7 = arith.constant 7.812500e-03 : f32
    %13 = vector.broadcast %cst_7 : f32 to vector<8x1xf32>
    %14 = arith.mulf %12, %13 : vector<8x1xf32>
    %15 = arith.subf %11, %14 : vector<8x1xf32>
    %cst_8 = arith.constant 1.270000e+02 : f32
    %16 = vector.broadcast %cst_8 : f32 to vector<8x1xf32>
    %17 = arith.divf %15, %16 : vector<8x1xf32>
    %cst_9 = arith.constant 0.000000e+00 : f32
    %18 = vector.broadcast %cst_9 : f32 to vector<8x1xf32>
    %19 = arith.maximumf %17, %18 : vector<8x1xf32>
    %20 = math.sqrt %19 : vector<8x1xf32>
    %cst_10 = arith.constant 1.000000e-07 : f32
    %21 = vector.broadcast %cst_10 : f32 to vector<8x1xf32>
    %22 = arith.addf %21, %20 : vector<8x1xf32>
    %cst_11 = arith.constant 5.000000e-01 : f32
    %23 = vector.broadcast %cst_11 : f32 to vector<8x1xf32>
    %24 = arith.divf %23, %22 : vector<8x1xf32>
    %25 = vector.broadcast %24 : vector<8x1xf32> to vector<8x128xf32>
    %26 = arith.mulf %6, %25 : vector<8x128xf32>
    %27 = math.exp %26 : vector<8x128xf32>
    %cst_12 = arith.constant dense<0.000000e+00> : vector<8xf32>
    %28 = vector.multi_reduction <add>, %27, %cst_12 [1] : vector<8x128xf32> to vector<8xf32>
    %29 = vector.shape_cast %28 : vector<8xf32> to vector<8x1xf32>
    %cst_13 = arith.constant dense<0xFF800000> : vector<8xf32>
    %30 = vector.multi_reduction <maximumf>, %1, %cst_13 [1] : vector<8x128xf32> to vector<8xf32>
    %31 = vector.shape_cast %30 : vector<8xf32> to vector<8x1xf32>
    %32 = vector.broadcast %31 : vector<8x1xf32> to vector<8x128xf32>
    %33 = arith.subf %1, %32 : vector<8x128xf32>
    %cst_14 = arith.constant dense<0.000000e+00> : vector<8xf32>
    %34 = vector.multi_reduction <add>, %33, %cst_14 [1] : vector<8x128xf32> to vector<8xf32>
    %35 = vector.shape_cast %34 : vector<8xf32> to vector<8x1xf32>
    %36 = arith.mulf %33, %33 : vector<8x128xf32>
    %cst_15 = arith.constant dense<0.000000e+00> : vector<8xf32>
    %37 = vector.multi_reduction <add>, %36, %cst_15 [1] : vector<8x128xf32> to vector<8xf32>
    %38 = vector.shape_cast %37 : vector<8xf32> to vector<8x1xf32>
    %39 = arith.mulf %35, %35 : vector<8x1xf32>
    %cst_16 = arith.constant 7.812500e-03 : f32
    %40 = vector.broadcast %cst_16 : f32 to vector<8x1xf32>
    %41 = arith.mulf %39, %40 : vector<8x1xf32>
    %42 = arith.subf %38, %41 : vector<8x1xf32>
    %cst_17 = arith.constant 1.270000e+02 : f32
    %43 = vector.broadcast %cst_17 : f32 to vector<8x1xf32>
    %44 = arith.divf %42, %43 : vector<8x1xf32>
    %cst_18 = arith.constant 0.000000e+00 : f32
    %45 = vector.broadcast %cst_18 : f32 to vector<8x1xf32>
    %46 = arith.maximumf %44, %45 : vector<8x1xf32>
    %47 = math.sqrt %46 : vector<8x1xf32>
    %cst_19 = arith.constant 1.000000e-07 : f32
    %48 = vector.broadcast %cst_19 : f32 to vector<8x1xf32>
    %49 = arith.addf %48, %47 : vector<8x1xf32>
    %cst_20 = arith.constant 5.000000e-01 : f32
    %50 = vector.broadcast %cst_20 : f32 to vector<8x1xf32>
    %51 = arith.divf %50, %49 : vector<8x1xf32>
    %52 = vector.broadcast %51 : vector<8x1xf32> to vector<8x128xf32>
    %53 = arith.mulf %33, %52 : vector<8x128xf32>
    %54 = math.exp %53 : vector<8x128xf32>
    %cst_21 = arith.constant dense<0.000000e+00> : vector<8xf32>
    %55 = vector.multi_reduction <add>, %54, %cst_21 [1] : vector<8x128xf32> to vector<8xf32>
    %56 = vector.shape_cast %55 : vector<8xf32> to vector<8x1xf32>
    %57 = arith.subf %53, %26 : vector<8x128xf32>
    %58 = arith.mulf %54, %57 : vector<8x128xf32>
    %cst_22 = arith.constant dense<0.000000e+00> : vector<8xf32>
    %59 = vector.multi_reduction <add>, %58, %cst_22 [1] : vector<8x128xf32> to vector<8xf32>
    %60 = vector.shape_cast %59 : vector<8xf32> to vector<8x1xf32>
    %61 = arith.divf %60, %56 : vector<8x1xf32>
    %62 = math.log %29 : vector<8x1xf32>
    %63 = arith.addf %61, %62 : vector<8x1xf32>
    %64 = math.log %56 : vector<8x1xf32>
    %65 = arith.subf %63, %64 : vector<8x1xf32>
    %66 = math.exp %6 : vector<8x128xf32>
    %cst_23 = arith.constant dense<0.000000e+00> : vector<8xf32>
    %67 = vector.multi_reduction <add>, %66, %cst_23 [1] : vector<8x128xf32> to vector<8xf32>
    %68 = vector.shape_cast %67 : vector<8xf32> to vector<8x1xf32>
    %69 = math.log %68 : vector<8x1xf32>
    %70 = tpu.iota {dimensions = array<i32: 1>} : vector<8x128xi32>
    %71 = vector.broadcast %2 : vector<8x1xi32> to vector<8x128xi32>
    %72 = arith.cmpi eq, %70, %71 : vector<8x128xi32>
    %cst_24 = arith.constant 0.000000e+00 : f32
    %73 = vector.broadcast %cst_24 : f32 to vector<8x128xf32>
    %74 = arith.select %72, %6, %73 : vector<8x128xi1>, vector<8x128xf32>
    %cst_25 = arith.constant dense<0.000000e+00> : vector<8xf32>
    %75 = vector.multi_reduction <add>, %74, %cst_25 [1] : vector<8x128xf32> to vector<8xf32>
    %76 = vector.shape_cast %75 : vector<8xf32> to vector<8x1xf32>
    %77 = arith.subf %69, %76 : vector<8x1xf32>
    %78 = tpu.iota {dimensions = array<i32: 0>} : vector<8x1xi32>
    %c8_i32 = arith.constant 8 : i32
    %79 = arith.muli %arg0, %c8_i32 : i32
    %80 = vector.broadcast %79 : i32 to vector<8x1xi32>
    %81 = arith.addi %78, %80 : vector<8x1xi32>
    %c8_i32_26 = arith.constant 8 : i32
    %82 = vector.broadcast %c8_i32_26 : i32 to vector<8x1xi32>
    %83 = arith.cmpi slt, %81, %82 : vector<8x1xi32>
    %cst_27 = arith.constant 0.000000e+00 : f32
    %84 = vector.broadcast %cst_27 : f32 to vector<8x1xf32>
    %85 = arith.select %83, %65, %84 : vector<8x1xi1>, vector<8x1xf32>
    %86 = vector.shape_cast %85 : vector<8x1xf32> to vector<1x8x1xf32>
    %cst_28 = arith.constant dense<0.000000e+00> : vector<1xf32>
    %87 = vector.multi_reduction <add>, %86, %cst_28 [1, 2] : vector<1x8x1xf32> to vector<1xf32>
    %88 = vector.shape_cast %87 : vector<1xf32> to vector<1x1x1xf32>
    %89 = vector.extract %88[0, 0, 0] : f32 from vector<1x1x1xf32>
    %cst_29 = arith.constant 0.000000e+00 : f32
    %90 = vector.broadcast %cst_29 : f32 to vector<8x1xf32>
    %91 = arith.select %83, %77, %90 : vector<8x1xi1>, vector<8x1xf32>
    %92 = vector.shape_cast %91 : vector<8x1xf32> to vector<1x8x1xf32>
    %cst_30 = arith.constant dense<0.000000e+00> : vector<1xf32>
    %93 = vector.multi_reduction <add>, %92, %cst_30 [1, 2] : vector<1x8x1xf32> to vector<1xf32>
    %94 = vector.shape_cast %93 : vector<1xf32> to vector<1x1x1xf32>
    %95 = vector.extract %94[0, 0, 0] : f32 from vector<1x1x1xf32>
    %96 = tpu.iota {dimensions = array<i32: 2>} : vector<1x1x128xi32>
    %c0_i32 = arith.constant 0 : i32
    %97 = vector.broadcast %c0_i32 : i32 to vector<1x1x128xi32>
    %98 = arith.cmpi eq, %96, %97 : vector<1x1x128xi32>
    %c1_i32 = arith.constant 1 : i32
    %99 = vector.broadcast %c1_i32 : i32 to vector<1x1x128xi32>
    %100 = arith.cmpi eq, %96, %99 : vector<1x1x128xi32>
    %cst_31 = arith.constant 0.000000e+00 : f32
    %101 = vector.broadcast %95 : f32 to vector<1x1x128xf32>
    %102 = vector.broadcast %cst_31 : f32 to vector<1x1x128xf32>
    %103 = arith.select %100, %101, %102 : vector<1x1x128xi1>, vector<1x1x128xf32>
    %104 = vector.broadcast %89 : f32 to vector<1x1x128xf32>
    %105 = arith.select %98, %104, %103 : vector<1x1x128xi1>, vector<1x1x128xf32>
    %c0_32 = arith.constant 0 : index
    %c0_33 = arith.constant 0 : index
    %c0_34 = arith.constant 0 : index
    %106 = vector.load %arg4[%c0_32, %c0_33, %c0_34] : memref<1x1x128xf32, #tpu.memory_space<vmem>>, vector<1x1x128xf32>
    tpu.vector_store %arg4[%c0_32, %c0_33, %c0_34], %105 {strides = array<i32>} : memref<1x1x128xf32, #tpu.memory_space<vmem>>, vector<1x1x128xf32>,
    return
  }
  func.func @transform_0(%arg0: i32) -> (i32, i32) {
    %c0_i32 = arith.constant 0 : i32
    %c0_i32_0 = arith.constant 0 : i32
    return %arg0, %c0_i32 : i32, i32
  }
  func.func @transform_1(%arg0: i32) -> (i32, i32) {
    %c0_i32 = arith.constant 0 : i32
    %c0_i32_0 = arith.constant 0 : i32
    return %arg0, %c0_i32 : i32, i32
  }
  func.func @transform_2(%arg0: i32) -> (i32, i32) {
    %c0_i32 = arith.constant 0 : i32
    %c0_i32_0 = arith.constant 0 : i32
    return %arg0, %c0_i32 : i32, i32
  }
  func.func @transform_3(%arg0: i32) -> (i32, i32, i32) {
    %c0_i32 = arith.constant 0 : i32
    %c0_i32_0 = arith.constant 0 : i32
    %c0_i32_1 = arith.constant 0 : i32
    return %arg0, %c0_i32, %c0_i32_0 : i32, i32, i32
  }
}

</mosaic_0001>

<bundles_post_ra>
// kernel: tpu_custom_call.1
= control target key start
LH: loop header
LB: loop body
LE: loop exit
PB: predicated region body
PF: predicated region fallthrough
CT: control target
= control target key end

     0   :  { %8 = vsyncpa [#allocation3], 0  ;;  %s283_s0 = inlined_call_operand.vmem [shape: f32[8,128], index: 0, kind: input, shape index: {}]   ;;  %s284_s1 = inlined_call_operand.hbm [shape: f32[8,128], index: 1, kind: input, shape index: {}]   ;;  %s285_s2 = inlined_call_operand.vmem [shape: s32[8,1], index: 2, kind: input, shape index: {}]   ;;  %s286_s3 = inlined_call_operand.hbm [shape: f32[1,1,128], index: 3, kind: output, shape index: {}]  }
   0x1   :  { %9 = vsyncpa [#allocation4], 0  ;;  %s240_s12 = smov [#allocation2]  }
   0x2   :  { %s18_s13 = sshll.u32 %s240_s12, 4  ;;  %s19_s13 = int_to_ptr.vmem [resolvable:$true] %s18_s13 }
   0x3   :  { %s204_s14 = scalar_lea.vmem %s19_s13, 128  ;;  %p209_p1 = scmp.lt.s32.totalorder %s19_s13, %s19_s13 }
   0x4   :  { %p205_p0 = scmp.ne.s32.totalorder %s19_s13, %s204_s14  ;;  %p210_p2 = scmp.lt.s32.totalorder %s204_s14, %s204_s14 }
   0x6   :  { %p211_p3 = por %p210_p2, %p209_p1 }
   0x8   :  { %p212_p4 = pnand %p211_p3, %p205_p0 }
   0xa   :  { %215 = shalt.err (!%p212_p4)
}
   0xb   :  { %21 = dma.hbm_to_vmem [thread:$0]  %s284_s1, 128, %s19_s13, [#allocation3]  }
   0xc   :  { %236 = dma.done.wait [#allocation3], 128  }
   0xd   :  { %237 = vsyncadd [#allocation3], 4294967168  ;;  %v27_v0 = vld [vmem:[%s283_s0] sm:$0xff]  ;;  %v241_v2 = vmov 0   ;;  %v105_v47 = vlaneseq  ;;  %vm122_vm5 = vcmask 7168   ;;  %s242_s19 = smov [#allocation5]  }
   0xe   :  { %30 = vmax.xlane.f32.xlu0 %v27_v0  ;;  %v28_v1 = vld [vmem:[#allocation2] sm:$0xff]  ;;  %s157_s20 = sshll.u32 %s242_s19, 4  ;;  %s158_s20 = int_to_ptr.vmem [resolvable:$true] %s157_s20 }
   0xf   :  { %173 = vset.pattern.permute.xlu0 %v241_v2  ;;  %v29_v9 = vld [vmem:[%s285_s2] sm:$0xff]  ;;  %v106_v49 = vand.u32 127, %v105_v47  ;;  %s216_s22 = scalar_lea.vmem %s158_s20, 16  ;;  %s220_s23 = scalar_lea.vmem %s158_s20, 32 }
  0x10   :  { %p217_p5 = scmp.ne.s32.totalorder %s158_s20, %s216_s22  ;;  %p221_p6 = scmp.lt.s32.totalorder %s158_s20, %s158_s20 }
  0x11   :  { %vm145_vm6 = vcmp.eq.s32.totalorder %v106_v49, 1  ;;  %vm144_vm7 = vcmp.eq.s32.totalorder %v106_v49, 0  ;;  %p222_p7 = scmp.lt.s32.totalorder %s220_s23, %s216_s22 }
  0x12   :  { %59 = vmax.xlane.f32.xlu0 %v28_v1 }
  0x13   :  { %p223_p8 = por %p222_p7, %p221_p6 }
  0x15   :  { %p224_p9 = pnand %p223_p8, %p217_p5 }
  0x97   :  { %v31_v3 = vpop.xlane.xlu0 %30 }
  0x98   :  { %v269_v4 = vsub.f32 %v27_v0, %v31_v3 }
  0x9a   :  { %33 = vadd.xlane.f32.xlu1 %v269_v4  ;;  %v35_v5 = vmul.f32 %v269_v4, %v269_v4  ;;  %v99_v44 = vmul.f32 1.442695, %v269_v4 }
  0x9b   :  { %v60_v6 = vpop.xlane.xlu0 %59 }
  0x9c   :  { %v61_v7 = vsub.f32 %v28_v1, %v60_v6  ;;  %36 = vadd.xlane.f32.xlu0 %v35_v5 }
  0x9e   :  { %62 = vadd.xlane.f32.xlu1 %v61_v7  ;;  %v64_v8 = vmul.f32 %v61_v7, %v61_v7 }
  0xa2   :  { %65 = vadd.xlane.f32.xlu1 %v64_v8 }
  0xb2   :  { %108 = vperm.xlu0 %173, %v29_v9  }
 0x123   :  { %v34_v10 = vpop.xlane.xlu1 %33 }
 0x124   :  { %v38_v11 = vmul.f32 %v34_v10, %v34_v10 }
 0x125   :  { %v37_v13 = vpop.xlane.xlu0 %36 }
 0x126   :  { %v39_v12 = vmul.f32 0.0078125, %v38_v11 }
 0x127   :  { %v63_v14 = vpop.xlane.xlu1 %62 }
 0x128   :  { %v40_v15 = vsub.f32 %v37_v13, %v39_v12  ;;  %v67_v16 = vmul.f32 %v63_v14, %v63_v14 }
 0x12a   :  { %v42_v17 = vmul.f32 0.007874016, %v40_v15  ;;  %v68_v18 = vmul.f32 0.0078125, %v67_v16 }
 0x12b   :  { %v66_v19 = vpop.xlane.xlu1 %65 }
 0x12c   :  { %v43_v20 = vmax.f32 %v42_v17, 0.0  ;;  %v69_v21 = vsub.f32 %v66_v19, %v68_v18 }
 0x12d   :  { %v109_v51 = vpop.permute.xlu0 %108 }
 0x12e   :  { %174 = vrsqrt.f32 %v43_v20  ;;  %v70_v22 = vmul.f32 0.007874016, %v69_v21  ;;  %vm46_vm0 = vcmp.eq.f32.partialorder %v43_v20, inf  ;;  %v49_v26 = vand.u32 2147483648, %v43_v20 }
 0x12f   :  { %vm48_vm1 = vcmp.eq.f32.partialorder %v43_v20, 0.0  ;;  %vm110_vm4 = vcmp.eq.s32.totalorder %v106_v49, %v109_v51 }
 0x130   :  { %v71_v23 = vmax.f32 %v70_v22, 0.0  ;;  %v111_v53 = vsel %vm110_vm4, %v269_v4, 0.0 }
 0x132   :  { %176 = vrsqrt.f32 %v71_v23  ;;  %vm74_vm2 = vcmp.eq.f32.partialorder %v71_v23, inf  ;;  %v77_v32 = vand.u32 2147483648, %v71_v23  ;;  %vm76_vm3 = vcmp.eq.f32.partialorder %v71_v23, 0.0 }
 0x13b   :  { %v175_v24 = vpop.eup %174 }
 0x13c   :  { %v45_v25 = vmul.f32 %v175_v24, %v43_v20 }
 0x13e   :  { %v47_v27 = vsel %vm46_vm0, %v43_v20, %v45_v25 }
 0x13f   :  { %v50_v28 = vsel %vm48_vm1, %v49_v26, %v47_v27  ;;  %v177_v29 = vpop.eup %176 }
 0x140   :  { %v51_v30 = vadd.f32 1e-07, %v50_v28  ;;  %v73_v31 = vmul.f32 %v177_v29, %v71_v23 }
 0x142   :  { %178 = vrcp.f32 %v51_v30  ;;  %v75_v33 = vsel %vm74_vm2, %v71_v23, %v73_v31 }
 0x143   :  { %v78_v34 = vsel %vm76_vm3, %v77_v32, %v75_v33 }
 0x144   :  { %v79_v35 = vadd.f32 1e-07, %v78_v34 }
 0x146   :  { %180 = vrcp.f32 %v79_v35 }
 0x14f   :  { %v179_v36 = vpop.eup %178 }
 0x150   :  { %v53_v37 = vmul.f32 0.5, %v179_v36 }
 0x152   :  { %v54_v38 = vmul.f32 %v53_v37, %v269_v4 }
 0x153   :  { %v181_v39 = vpop.eup %180 }
 0x154   :  { %v55_v40 = vmul.f32 1.442695, %v54_v38  ;;  %v81_v41 = vmul.f32 0.5, %v181_v39 }
 0x156   :  { %182 = vpow2.f32 %v55_v40  ;;  %v82_v42 = vmul.f32 %v81_v41, %v61_v7 }
 0x158   :  { %v83_v43 = vmul.f32 1.442695, %v82_v42  ;;  %v87_v50 = vsub.f32 %v82_v42, %v54_v38 }
 0x15a   :  { %184 = vpow2.f32 %v83_v43 }
 0x15b   :  { %186 = vpow2.f32 %v99_v44 }
 0x163   :  { %v183_v45 = vpop.eup %182 }
 0x164   :  { %57 = vadd.xlane.f32.xlu1 %v183_v45 }
 0x167   :  { %v185_v46 = vpop.eup %184 }
 0x168   :  { %85 = vadd.xlane.f32.xlu1 %v185_v46  ;;  %v187_v48 = vpop.eup %186  ;;  %v88_v52 = vmul.f32 %v185_v46, %v87_v50 }
 0x16c   :  { %101 = vadd.xlane.f32.xlu1 %v187_v48 }
 0x170   :  { %89 = vadd.xlane.f32.xlu1 %v88_v52 }
 0x174   :  { %112 = vadd.xlane.f32.xlu1 %v111_v53 }
 0x1ed   :  { %v58_v54 = vpop.xlane.xlu1 %57 }
 0x1ee   :  { %188 = vlog2.f32 %v58_v54 }
 0x1f1   :  { %v86_v55 = vpop.xlane.xlu1 %85 }
 0x1f2   :  { %190 = vrcp.f32 %v86_v55 }
 0x1f3   :  { %192 = vlog2.f32 %v86_v55 }
 0x1f5   :  { %v102_v56 = vpop.xlane.xlu1 %101 }
 0x1f6   :  { %194 = vlog2.f32 %v102_v56 }
 0x1f9   :  { %v90_v59 = vpop.xlane.xlu1 %89 }
 0x1fb   :  { %v189_v57 = vpop.eup %188 }
 0x1fc   :  { %v94_v61 = vmul.f32 0.6931472, %v189_v57 }
 0x1fd   :  { %v113_v4 = vpop.xlane.xlu1 %112 }
 0x1ff   :  { %v191_v58 = vpop.eup %190 }
 0x200   :  { %v193_v60 = vpop.eup %192  ;;  %v92_v62 = vmul.f32 %v191_v58, %v90_v59 }
 0x201   :  { %v97_v0 = vmul.f32 0.6931472, %v193_v60 }
 0x202   :  { %v95_v63 = vadd.f32 %v94_v61, %v92_v62 }
 0x203   :  { %v195_v1 = vpop.eup %194 }
 0x204   :  { %v104_v2 = vmul.f32 0.6931472, %v195_v1  ;;  %v98_v3 = vsub.f32 %v95_v63, %v97_v0 }
 0x206   :  { %v114_v5 = vsub.f32 %v104_v2, %v113_v4  ;;  %v123_v6 = vsel %vm122_vm5, %v98_v3, 0.0 }
 0x207   :  { %124 = vadd.xlane.f32.xlu1 %v123_v6 }
 0x208   :  { %v134_v7 = vsel %vm122_vm5, %v114_v5, 0.0 }
 0x20b   :  { %135 = vadd.xlane.f32.xlu1 %v134_v7 }
 0x290   :  { %v125_v8 = vpop.xlane.xlu1 %124 }
 0x291   :  { %v126_v9 = vrot.slane %v125_v8, 4 }
 0x293   :  { %v127_v10 = vadd.f32 %v126_v9, %v125_v8 }
 0x294   :  { %v136_v11 = vpop.xlane.xlu1 %135 }
 0x295   :  { %v128_v12 = vrot.slane %v127_v10, 2  ;;  %v137_v13 = vrot.slane %v136_v11, 4 }
 0x297   :  { %v138_v14 = vadd.f32 %v137_v13, %v136_v11  ;;  %v129_v15 = vadd.f32 %v128_v12, %v127_v10 }
 0x299   :  { %v139_v16 = vrot.slane %v138_v14, 2  ;;  %v130_v17 = vrot.slane %v129_v15, 1 }
 0x29b   :  { %v140_v18 = vadd.f32 %v139_v16, %v138_v14  ;;  %v131_v19 = vadd.f32 %v130_v17, %v129_v15 }
 0x29d   :  { %166 = vpush %v131_v19  ;;  %v141_v20 = vrot.slane %v140_v18, 1 }
 0x29f   :  { %v142_v21 = vadd.f32 %v141_v20, %v140_v18 }
 0x2a1   :  { %168 = vpush %v142_v21 }
 0x2ce   :  { %s167_s2 = spop %166 }
 0x2cf   :  { %v148_v23 = vstv %s167_s2 }
 0x2d2   :  { %s169_s21 = spop %168 }
 0x2d3   :  { %v146_v22 = vstv %s169_s21 }
 0x2d4   :  { %v147_v24 = vsel %vm145_vm6, %v146_v22, 0.0 }
 0x2d5   :  { %v149_v25 = vsel %vm144_vm7, %v148_v23, %v147_v24 }
 0x2d6   :  { %150 = vst [vmem:[#allocation5] sm:$0x1] %v149_v25 }
 0x2d7   :  { %227 = shalt.err (!%p224_p9)
}
 0x2d8   :  { %160 = dma.vmem_to_hbm [thread:$0]  %s158_s20, 16, %s286_s3, [#allocation4]  }
 0x2d9   :  { %238 = dma.done.wait [#allocation4], 16  }
 0x2da   :  { %239 = vsyncadd [#allocation4], 4294967280 }
 0x2db   :  { %164 = vsyncpa [#allocation3], 1 }
 0x2dc   :  { %165 = vsyncpa [#allocation4], 1 }

</bundles_post_ra>
